<compile_context>
chip_gen: v7x
topology: tpu7x:2x2x1
jax: 0.10.0
libtpu: 0.0.40
codegen_flags: <defaults>
</compile_context>

<pallas_src>
import jax
import jax.numpy as jnp
from jax.experimental import pallas as pl
from jax.experimental.pallas import tpu as pltpu


def mlp_kernel(x_ref,
               w1_ref, b1_ref,
               w2_ref, b2_ref,
               w3_ref, b3_ref,
               w4_ref, b4_ref,
               o_ref):
    # In-kernel bf16 cast of the streamed x tile (VALU has plenty of slack);
    # every matmul accumulates in f32 on the MXU.
    x = x_ref[...].astype(jnp.bfloat16)
    h = jnp.dot(x, w1_ref[...], preferred_element_type=jnp.float32) + b1_ref[...]
    h = jnp.maximum(h, 0.0)
    h = jnp.dot(h.astype(jnp.bfloat16), w2_ref[...],
                preferred_element_type=jnp.float32) + b2_ref[...]
    h = jnp.maximum(h, 0.0)
    h = jnp.dot(h.astype(jnp.bfloat16), w3_ref[...],
                preferred_element_type=jnp.float32) + b3_ref[...]
    h = jnp.maximum(h, 0.0)
    z = jnp.dot(h.astype(jnp.bfloat16), w4_ref[...],
                preferred_element_type=jnp.float32) + b4_ref[...]
    # Exact sigmoid: exp goes to the EUP; the divide is off the critical path.
    o_ref[...] = 1.0 / (1.0 + jnp.exp(-z))


def _pick_block_b(B):
    """Batch tile: multiple of 256 (fills v6e/v7x 256-row MXU, 128-multiple for
    v5e) targeting an even number of grid steps (v7x's 2 TensorCores)."""
    if B <= 256:
        return 256
    half = pl.cdiv(B, 2)
    return min(1024, 256 * pl.cdiv(half, 256))


def mlp_forward(x, params, *, block_b=None):
    """x: (B, input_size) float32; params: list of (W, b) with W:(in, out), b:(1, out)."""
    (w1, b1), (w2, b2), (w3, b3), (w4, b4) = params
    B, in_size = x.shape
    hidden = w1.shape[1]
    out_size = w4.shape[1]

    if block_b is None:
        block_b = _pick_block_b(B)

    # Pad the batch only if needed; padded rows are sliced off afterwards.
    b_pad = pl.cdiv(B, block_b) * block_b
    xp = x.astype(jnp.float32)
    if b_pad != B:
        xp = jnp.pad(xp, ((0, b_pad - B), (0, 0)))

    # bf16 matmul weights (halves weight DMA bytes, MXU-native); f32 biases.
    w1b, w2b, w3b, w4b = (w.astype(jnp.bfloat16) for w in (w1, w2, w3, w4))
    b1f, b2f, b3f, b4f = (b.reshape(1, -1).astype(jnp.float32)
                          for b in (b1, b2, b3, b4))

    grid = (b_pad // block_b,)
    resident = lambda i: (0, 0)  # same block index every step -> stays in VMEM

    flops = 2 * b_pad * (in_size * hidden + 2 * hidden * hidden + hidden * out_size)
    bytes_accessed = (xp.size * 4
                      + sum(int(w.size) * 2 for w in (w1b, w2b, w3b, w4b))
                      + (b1f.size + b2f.size + b3f.size + b4f.size) * 4
                      + b_pad * out_size * 4)

    out = pl.pallas_call(
        mlp_kernel,
        out_shape=jax.ShapeDtypeStruct((b_pad, out_size), jnp.float32),
        grid_spec=pltpu.PrefetchScalarGridSpec(
            num_scalar_prefetch=0,
            grid=grid,
            in_specs=[
                pl.BlockSpec((block_b, in_size), lambda i: (i, 0)),  # x streams
                pl.BlockSpec((in_size, hidden), resident),
                pl.BlockSpec((1, hidden), resident),
                pl.BlockSpec((hidden, hidden), resident),
                pl.BlockSpec((1, hidden), resident),
                pl.BlockSpec((hidden, hidden), resident),
                pl.BlockSpec((1, hidden), resident),
                pl.BlockSpec((hidden, out_size), resident),
                pl.BlockSpec((1, out_size), resident),
            ],
            out_specs=pl.BlockSpec((block_b, out_size), lambda i: (i, 0)),
        ),
        compiler_params=pltpu.CompilerParams(
            # only shard the batch axis across v7x's 2 TCs when there is >1 step
            dimension_semantics=("parallel",) if grid[0] > 1 else ("arbitrary",),
            vmem_limit_bytes=32 * 1024 * 1024,
        ),
        cost_estimate=pl.CostEstimate(
            flops=flops,
            transcendentals=b_pad * out_size,
            bytes_accessed=bytes_accessed,
        ),
    )(xp, w1b, b1f, w2b, b2f, w3b, b3f, w4b, b4f)

    return out if b_pad == B else out[:B]


def init_params(key, input_size, hidden_size, output_size):
    """Deterministic init mimicking nn.Linear's uniform(-1/sqrt(fan_in), 1/sqrt(fan_in)).
    Weights stored pre-transposed as (in, out) so the kernel computes y = x @ W + b."""
    dims = [(input_size, hidden_size),
            (hidden_size, hidden_size),
            (hidden_size, hidden_size),
            (hidden_size, output_size)]
    params = []
    for (fan_in, fan_out) in dims:
        key, kw, kb = jax.random.split(key, 3)
        bound = 1.0 / jnp.sqrt(fan_in)
        W = jax.random.uniform(kw, (fan_in, fan_out), jnp.float32, -bound, bound)
        b = jax.random.uniform(kb, (1, fan_out), jnp.float32, -bound, bound)
        params.append((W, b))
    return params


def mlp_reference(x, params):
    """Pure-JAX reference matching the kernel's numerics (bf16 matmul in, f32 acc)."""
    h = x.astype(jnp.bfloat16)
    n = len(params)
    for i, (W, b) in enumerate(params):
        h = jnp.dot(h, W.astype(jnp.bfloat16),
                    preferred_element_type=jnp.float32) + b.reshape(1, -1)
        if i < n - 1:
            h = jnp.maximum(h, 0.0).astype(jnp.bfloat16)
        else:
            h = jax.nn.sigmoid(h)
    return h


if __name__ == "__main__":
    key = jax.random.PRNGKey(0)
    # Small, spec-consistent sizes; batch=300 exercises the ragged-batch path
    # (padded to 2 tiles of 256 -> even grid for v7x's two TensorCores).
    batch, input_size, hidden_size, output_size = 300, 16, 32, 4

    kx, kp = jax.random.split(key)
    x = jax.random.normal(kx, (batch, input_size), jnp.float32)
    params = init_params(kp, input_size, hidden_size, output_size)

    out = mlp_forward(x, params)
    out = jax.block_until_ready(out)

    ref = mlp_reference(x, params)
    assert out.shape == (batch, output_size)
    assert jnp.allclose(out, ref, atol=5e-3, rtol=5e-3), "mismatch vs reference"

    print("KERNEL_OK")
</pallas_src>

<mosaic_0001>
module attributes {stable_mosaic.version = 11 : i64} {
  func.func @mlp_kernel(%arg0: i32, %arg1: memref<256x16xf32, #tpu.memory_space<vmem>>, %arg2: memref<16x32xbf16, #tpu.memory_space<vmem>>, %arg3: memref<1x32xf32, #tpu.memory_space<vmem>>, %arg4: memref<32x32xbf16, #tpu.memory_space<vmem>>, %arg5: memref<1x32xf32, #tpu.memory_space<vmem>>, %arg6: memref<32x32xbf16, #tpu.memory_space<vmem>>, %arg7: memref<1x32xf32, #tpu.memory_space<vmem>>, %arg8: memref<32x4xbf16, #tpu.memory_space<vmem>>, %arg9: memref<1x4xf32, #tpu.memory_space<vmem>>, %arg10: memref<256x4xf32, #tpu.memory_space<vmem>>) attributes {dimension_semantics = [#tpu.dimension_semantics<parallel>], iteration_bounds = array<i64: 2>, scalar_prefetch = 0 : i64, scratch_operands = 0 : i64, tpu.core_type = #tpu.core_type<tc>, window_params = [{transform_indices = @transform_0, window_bounds = array<i64: 256, 16>}, {pipeline_mode = #tpu.pipeline_mode<synchronous>, transform_indices = @transform_1, window_bounds = array<i64: 16, 32>}, {pipeline_mode = #tpu.pipeline_mode<synchronous>, transform_indices = @transform_2, window_bounds = array<i64: 1, 32>}, {pipeline_mode = #tpu.pipeline_mode<synchronous>, transform_indices = @transform_3, window_bounds = array<i64: 32, 32>}, {pipeline_mode = #tpu.pipeline_mode<synchronous>, transform_indices = @transform_4, window_bounds = array<i64: 1, 32>}, {pipeline_mode = #tpu.pipeline_mode<synchronous>, transform_indices = @transform_5, window_bounds = array<i64: 32, 32>}, {pipeline_mode = #tpu.pipeline_mode<synchronous>, transform_indices = @transform_6, window_bounds = array<i64: 1, 32>}, {pipeline_mode = #tpu.pipeline_mode<synchronous>, transform_indices = @transform_7, window_bounds = array<i64: 32, 4>}, {pipeline_mode = #tpu.pipeline_mode<synchronous>, transform_indices = @transform_8, window_bounds = array<i64: 1, 4>}, {transform_indices = @transform_9, window_bounds = array<i64: 256, 4>}]} {
    %c0 = arith.constant 0 : index
    %c0_0 = arith.constant 0 : index
    %0 = vector.load %arg1[%c0, %c0_0] : memref<256x16xf32, #tpu.memory_space<vmem>>, vector<256x16xf32>
    %1 = arith.truncf %0 : vector<256x16xf32> to vector<256x16xbf16>
    %c0_1 = arith.constant 0 : index
    %c0_2 = arith.constant 0 : index
    %2 = vector.load %arg2[%c0_1, %c0_2] : memref<16x32xbf16, #tpu.memory_space<vmem>>, vector<16x32xbf16>
    %cst = arith.constant dense<0.000000e+00> : vector<256x32xf32>
    %3 = tpu.matmul %1, %2, %cst {dimension_numbers = #tpu.dot_dimension_numbers<[1], [0], [0], [1], [0, 0, 1, 1], [], []>} : vector<256x16xbf16>, vector<16x32xbf16>, vector<256x32xf32> -> vector<256x32xf32>
    %c0_3 = arith.constant 0 : index
    %c0_4 = arith.constant 0 : index
    %4 = vector.load %arg3[%c0_3, %c0_4] : memref<1x32xf32, #tpu.memory_space<vmem>>, vector<1x32xf32>
    %5 = vector.broadcast %4 : vector<1x32xf32> to vector<256x32xf32>
    %6 = arith.addf %3, %5 : vector<256x32xf32>
    %cst_5 = arith.constant 0.000000e+00 : f32
    %7 = vector.broadcast %cst_5 : f32 to vector<256x32xf32>
    %8 = arith.maximumf %6, %7 : vector<256x32xf32>
    %9 = arith.truncf %8 : vector<256x32xf32> to vector<256x32xbf16>
    %c0_6 = arith.constant 0 : index
    %c0_7 = arith.constant 0 : index
    %10 = vector.load %arg4[%c0_6, %c0_7] : memref<32x32xbf16, #tpu.memory_space<vmem>>, vector<32x32xbf16>
    %cst_8 = arith.constant dense<0.000000e+00> : vector<256x32xf32>
    %11 = tpu.matmul %9, %10, %cst_8 {dimension_numbers = #tpu.dot_dimension_numbers<[1], [0], [0], [1], [0, 0, 1, 1], [], []>} : vector<256x32xbf16>, vector<32x32xbf16>, vector<256x32xf32> -> vector<256x32xf32>
    %c0_9 = arith.constant 0 : index
    %c0_10 = arith.constant 0 : index
    %12 = vector.load %arg5[%c0_9, %c0_10] : memref<1x32xf32, #tpu.memory_space<vmem>>, vector<1x32xf32>
    %13 = vector.broadcast %12 : vector<1x32xf32> to vector<256x32xf32>
    %14 = arith.addf %11, %13 : vector<256x32xf32>
    %cst_11 = arith.constant 0.000000e+00 : f32
    %15 = vector.broadcast %cst_11 : f32 to vector<256x32xf32>
    %16 = arith.maximumf %14, %15 : vector<256x32xf32>
    %17 = arith.truncf %16 : vector<256x32xf32> to vector<256x32xbf16>
    %c0_12 = arith.constant 0 : index
    %c0_13 = arith.constant 0 : index
    %18 = vector.load %arg6[%c0_12, %c0_13] : memref<32x32xbf16, #tpu.memory_space<vmem>>, vector<32x32xbf16>
    %cst_14 = arith.constant dense<0.000000e+00> : vector<256x32xf32>
    %19 = tpu.matmul %17, %18, %cst_14 {dimension_numbers = #tpu.dot_dimension_numbers<[1], [0], [0], [1], [0, 0, 1, 1], [], []>} : vector<256x32xbf16>, vector<32x32xbf16>, vector<256x32xf32> -> vector<256x32xf32>
    %c0_15 = arith.constant 0 : index
    %c0_16 = arith.constant 0 : index
    %20 = vector.load %arg7[%c0_15, %c0_16] : memref<1x32xf32, #tpu.memory_space<vmem>>, vector<1x32xf32>
    %21 = vector.broadcast %20 : vector<1x32xf32> to vector<256x32xf32>
    %22 = arith.addf %19, %21 : vector<256x32xf32>
    %cst_17 = arith.constant 0.000000e+00 : f32
    %23 = vector.broadcast %cst_17 : f32 to vector<256x32xf32>
    %24 = arith.maximumf %22, %23 : vector<256x32xf32>
    %25 = arith.truncf %24 : vector<256x32xf32> to vector<256x32xbf16>
    %c0_18 = arith.constant 0 : index
    %c0_19 = arith.constant 0 : index
    %26 = vector.load %arg8[%c0_18, %c0_19] : memref<32x4xbf16, #tpu.memory_space<vmem>>, vector<32x4xbf16>
    %cst_20 = arith.constant dense<0.000000e+00> : vector<256x4xf32>
    %27 = tpu.matmul %25, %26, %cst_20 {dimension_numbers = #tpu.dot_dimension_numbers<[1], [0], [0], [1], [0, 0, 1, 1], [], []>} : vector<256x32xbf16>, vector<32x4xbf16>, vector<256x4xf32> -> vector<256x4xf32>
    %c0_21 = arith.constant 0 : index
    %c0_22 = arith.constant 0 : index
    %28 = vector.load %arg9[%c0_21, %c0_22] : memref<1x4xf32, #tpu.memory_space<vmem>>, vector<1x4xf32>
    %29 = vector.broadcast %28 : vector<1x4xf32> to vector<256x4xf32>
    %30 = arith.addf %27, %29 : vector<256x4xf32>
    %cst_23 = arith.constant 0.000000e+00 : f32
    %31 = vector.broadcast %cst_23 : f32 to vector<256x4xf32>
    %32 = arith.subf %31, %30 : vector<256x4xf32>
    %33 = math.exp %32 : vector<256x4xf32>
    %cst_24 = arith.constant 1.000000e+00 : f32
    %34 = vector.broadcast %cst_24 : f32 to vector<256x4xf32>
    %35 = arith.addf %34, %33 : vector<256x4xf32>
    %cst_25 = arith.constant 1.000000e+00 : f32
    %36 = vector.broadcast %cst_25 : f32 to vector<256x4xf32>
    %37 = arith.divf %36, %35 : vector<256x4xf32>
    %c0_26 = arith.constant 0 : index
    %c0_27 = arith.constant 0 : index
    %38 = vector.load %arg10[%c0_26, %c0_27] : memref<256x4xf32, #tpu.memory_space<vmem>>, vector<256x4xf32>
    tpu.vector_store %arg10[%c0_26, %c0_27], %37 {strides = array<i32>} : memref<256x4xf32, #tpu.memory_space<vmem>>, vector<256x4xf32>,
    return
  }
  func.func @transform_0(%arg0: i32) -> (i32, i32) {
    %c0_i32 = arith.constant 0 : i32
    %c0_i32_0 = arith.constant 0 : i32
    return %arg0, %c0_i32 : i32, i32
  }
  func.func @transform_1(%arg0: i32) -> (i32, i32) {
    %c0_i32 = arith.constant 0 : i32
    %c0_i32_0 = arith.constant 0 : i32
    %c0_i32_1 = arith.constant 0 : i32
    return %c0_i32, %c0_i32_0 : i32, i32
  }
  func.func @transform_2(%arg0: i32) -> (i32, i32) {
    %c0_i32 = arith.constant 0 : i32
    %c0_i32_0 = arith.constant 0 : i32
    %c0_i32_1 = arith.constant 0 : i32
    return %c0_i32, %c0_i32_0 : i32, i32
  }
  func.func @transform_3(%arg0: i32) -> (i32, i32) {
    %c0_i32 = arith.constant 0 : i32
    %c0_i32_0 = arith.constant 0 : i32
    %c0_i32_1 = arith.constant 0 : i32
    return %c0_i32, %c0_i32_0 : i32, i32
  }
  func.func @transform_4(%arg0: i32) -> (i32, i32) {
    %c0_i32 = arith.constant 0 : i32
    %c0_i32_0 = arith.constant 0 : i32
    %c0_i32_1 = arith.constant 0 : i32
    return %c0_i32, %c0_i32_0 : i32, i32
  }
  func.func @transform_5(%arg0: i32) -> (i32, i32) {
    %c0_i32 = arith.constant 0 : i32
    %c0_i32_0 = arith.constant 0 : i32
    %c0_i32_1 = arith.constant 0 : i32
    return %c0_i32, %c0_i32_0 : i32, i32
  }
  func.func @transform_6(%arg0: i32) -> (i32, i32) {
    %c0_i32 = arith.constant 0 : i32
    %c0_i32_0 = arith.constant 0 : i32
    %c0_i32_1 = arith.constant 0 : i32
    return %c0_i32, %c0_i32_0 : i32, i32
  }
  func.func @transform_7(%arg0: i32) -> (i32, i32) {
    %c0_i32 = arith.constant 0 : i32
    %c0_i32_0 = arith.constant 0 : i32
    %c0_i32_1 = arith.constant 0 : i32
    return %c0_i32, %c0_i32_0 : i32, i32
  }
  func.func @transform_8(%arg0: i32) -> (i32, i32) {
    %c0_i32 = arith.constant 0 : i32
    %c0_i32_0 = arith.constant 0 : i32
    %c0_i32_1 = arith.constant 0 : i32
    return %c0_i32, %c0_i32_0 : i32, i32
  }
  func.func @transform_9(%arg0: i32) -> (i32, i32) {
    %c0_i32 = arith.constant 0 : i32
    %c0_i32_0 = arith.constant 0 : i32
    return %arg0, %c0_i32 : i32, i32
  }
}

</mosaic_0001>

<bundles_post_ra>
// kernel: tpu_custom_call.1
= control target key start
LH: loop header
LB: loop body
LE: loop exit
PB: predicated region body
PF: predicated region fallthrough
CT: control target
= control target key end

     0   :  { %s2232_s30 = smov 0   ;;  %s2589_s0 = inlined_call_operand.vmem [shape: f32[512,16], index: 0, kind: input, shape index: {}]   ;;  %s2590_s1 = inlined_call_operand.vmem [shape: bf16[16,32], index: 1, kind: input, shape index: {}]   ;;  %s2591_s2 = inlined_call_operand.vmem [shape: f32[1,32], index: 2, kind: input, shape index: {}]   ;;  %s2592_s3 = inlined_call_operand.vmem [shape: bf16[32,32], index: 3, kind: input, shape index: {}]   ;;  %s2593_s4 = inlined_call_operand.vmem [shape: f32[1,32], index: 4, kind: input, shape index: {}]   ;;  %s2594_s5 = inlined_call_operand.vmem [shape: bf16[32,32], index: 5, kind: input, shape index: {}]   ;;  %s2595_s6 = inlined_call_operand.vmem [shape: f32[1,32], index: 6, kind: input, shape index: {}]   ;;  %s2596_s7 = inlined_call_operand.vmem [shape: bf16[32,4], index: 7, kind: input, shape index: {}]   ;;  %s2597_s8 = inlined_call_operand.vmem [shape: f32[1,4], index: 8, kind: input, shape index: {}]   ;;  %s2598_s9 = inlined_call_operand.vmem [shape: f32[512,4], index: 9, kind: output, shape index: {}]  }
   0x1 LB: > { %s1732_s10 = sadd.s32 4294967295, %s2180_s30   ;;  %p1736_p0 = scmp.ge.s32.totalorder %s2180_s30, 1  ;;  %s2180_s30 = sphi %s2232_s30, %s19_s30  }
   0x2   : > { %p288_p1 = scmp.lt.s32.totalorder %s2180_s30, 3 }
   0x4   : > { %p289_p2 = pnand %p1736_p0, %p288_p1 }
   0x5   : > { %v2039_v0 = vld [vmem:[%s2590_s1] sm:$0xff] (!%p289_p2)   ;;  %s1737_s13 = sshll.u32 (!%p289_p2), %s1732_s10, 5  ;;  %vm400_vm0 = vcmask (!%p289_p2), 130048   ;;  %v2041_v50 = vld [vmem:[%s2592_s3 + $0x8] sm:$0xff] (!%p289_p2)   ;;  %vm681_vm1 = vcmask (!%p289_p2), 261120   ;;  %vm1643_vm2 = vcmask (!%p289_p2), 31744  }
   0x6   : > { %292 = sbr.rel (%p289_p2) target bundleno = 991 (0x3df), region = 56  ;;  %p325_p3 = scmp.lt.s32.totalorder (!%p289_p2), %s1737_s13, 63  ;;  %1889 = vmatprep.subr.bf16.mxu0 (!%p289_p2), %v2039_v0  ;;  %v2040_v49 = vld [vmem:[%s2592_s3] sm:$0xff] (!%p289_p2)   ;;  %v2043_v52 = vld [vmem:[%s2594_s5 + $0x8] sm:$0xff] (!%p289_p2)  }
   0x7   : > { %1890 = vmatpush3.bf16.msra.mxu0 (!%p289_p2), %v2039_v0  ;;  %1923 = vmatprep.subr.bf16.mxu1 (!%p289_p2), %v2040_v49  ;;  %v2042_v51 = vld [vmem:[%s2594_s5] sm:$0xff] (!%p289_p2)  }
   0x8   : > { %1924 = vmatpush3.bf16.msra.mxu1 (!%p289_p2), %v2040_v49  ;;  %1959 = vmatprep.subr.bf16.mxu0 (!%p289_p2), %v2042_v51  ;;  %v2316_v53 = vld [vmem:[%s2591_s2] ss:$0 sm:$0xff] (!%p289_p2) }
   0x9   : > { %1925 = vmatprep.subr.bf16.mxu1 (!%p289_p2), %v2041_v50 }
   0xc   : > { %1926 = vmatpush3.bf16.msra.mxu1 (!%p289_p2), %v2041_v50 }
   0xd   : > { %s2600_s13 = smov (!%p325_p3, %s1737_s13), 63 }
   0xe   : > { %s1738_s14 = sshll.u32 %s2600_s13, 3 }
   0xf   : > { %s2251_s17 = scalar_lea.vmem %s2589_s0, %s1738_s14  ;;  %s2503_s22 = scalar_lea.vmem %s2598_s9, %s1738_s14 }
  0x10   : > { %v337_v1 = vld [vmem:[%s2251_s17] sm:$0xff]  ;;  %v338_v2 = vld [vmem:[%s2251_s17 + $0x8] sm:$0xff]  ;;  %v339_v3 = vld [vmem:[%s2251_s17 + $0x10] sm:$0xff] }
  0x11   : > { %v369_v4 = vpack.c.bf16 %v338_v2, %v337_v1  ;;  %v340_v5 = vld [vmem:[%s2251_s17 + $0x18] sm:$0xff]  ;;  %v341_v6 = vld [vmem:[%s2251_s17 + $0x20] sm:$0xff]  ;;  %v342_v7 = vld [vmem:[%s2251_s17 + $0x28] sm:$0xff] }
  0x12   : > { %v370_v8 = vpack.c.bf16 %v340_v5, %v339_v3  ;;  %v371_v9 = vpack.c.bf16 %v342_v7, %v341_v6  ;;  %v343_v10 = vld [vmem:[%s2251_s17 + $0x30] sm:$0xff]  ;;  %v344_v11 = vld [vmem:[%s2251_s17 + $0x38] sm:$0xff]  ;;  %v345_v12 = vld [vmem:[%s2251_s17 + $0x40] sm:$0xff] }
  0x13   : > { %1891 = vmatprep.mubr.msk.bf16.mxu0 %vm400_vm0, %v369_v4  ;;  %v346_v13 = vld [vmem:[%s2251_s17 + $0x48] sm:$0xff]  ;;  %v372_v14 = vpack.c.bf16 %v344_v11, %v343_v10  ;;  %v347_v16 = vld [vmem:[%s2251_s17 + $0x50] sm:$0xff]  ;;  %v348_v17 = vld [vmem:[%s2251_s17 + $0x58] sm:$0xff] }
  0x14   : > { %1892 = vmatmul.mubr.msk.bf16.vlgmr.msra.gmra.mrb[0].mxu0 %vm400_vm0, %v370_v8  ;;  %v373_v15 = vpack.c.bf16 %v346_v13, %v345_v12  ;;  %v349_v18 = vld [vmem:[%s2251_s17 + $0x60] sm:$0xff]  ;;  %v350_v19 = vld [vmem:[%s2251_s17 + $0x68] sm:$0xff]  ;;  %v374_v20 = vpack.c.bf16 %v348_v17, %v347_v16  ;;  %v351_v22 = vld [vmem:[%s2251_s17 + $0x70] sm:$0xff] }
  0x15   : > { %1895 = vmatprep.mubr.msk.bf16.mxu0 %vm400_vm0, %v371_v9  ;;  %v375_v21 = vpack.c.bf16 %v350_v19, %v349_v18  ;;  %v352_v23 = vld [vmem:[%s2251_s17 + $0x78] sm:$0xff]  ;;  %v353_v24 = vld [vmem:[%s2251_s17 + $0x80] sm:$0xff]  ;;  %v354_v25 = vld [vmem:[%s2251_s17 + $0x88] sm:$0xff]  ;;  %1960 = vmatpush3.bf16.msra.mxu0 %v2042_v51 }
  0x16   : > { %v376_v26 = vpack.c.bf16 %v352_v23, %v351_v22  ;;  %v377_v27 = vpack.c.bf16 %v354_v25, %v353_v24  ;;  %v355_v28 = vld [vmem:[%s2251_s17 + $0x90] sm:$0xff]  ;;  %v356_v29 = vld [vmem:[%s2251_s17 + $0x98] sm:$0xff]  ;;  %v357_v30 = vld [vmem:[%s2251_s17 + $0xa0] sm:$0xff]  ;;  %1961 = vmatprep.subr.bf16.mxu0 %v2043_v52 }
  0x17   : > { %v358_v31 = vld [vmem:[%s2251_s17 + $0xa8] sm:$0xff]  ;;  %v378_v32 = vpack.c.bf16 %v356_v29, %v355_v28  ;;  %v359_v34 = vld [vmem:[%s2251_s17 + $0xb0] sm:$0xff]  ;;  %v360_v35 = vld [vmem:[%s2251_s17 + $0xb8] sm:$0xff] }
  0x18   : > { %v379_v33 = vpack.c.bf16 %v358_v31, %v357_v30  ;;  %v361_v36 = vld [vmem:[%s2251_s17 + $0xc0] sm:$0xff]  ;;  %v362_v37 = vld [vmem:[%s2251_s17 + $0xc8] sm:$0xff]  ;;  %v380_v38 = vpack.c.bf16 %v360_v35, %v359_v34  ;;  %v363_v40 = vld [vmem:[%s2251_s17 + $0xd0] sm:$0xff] }
  0x19   : > { %v381_v39 = vpack.c.bf16 %v362_v37, %v361_v36  ;;  %v364_v41 = vld [vmem:[%s2251_s17 + $0xd8] sm:$0xff]  ;;  %v365_v42 = vld [vmem:[%s2251_s17 + $0xe0] sm:$0xff]  ;;  %v366_v43 = vld [vmem:[%s2251_s17 + $0xe8] sm:$0xff]  ;;  %1962 = vmatpush3.bf16.msra.mxu0 %v2043_v52 }
  0x1a   : > { %v382_v44 = vpack.c.bf16 %v364_v41, %v363_v40  ;;  %v383_v45 = vpack.c.bf16 %v366_v43, %v365_v42  ;;  %v367_v46 = vld [vmem:[%s2251_s17 + $0xf0] sm:$0xff]  ;;  %v368_v47 = vld [vmem:[%s2251_s17 + $0xf8] sm:$0xff] }
  0x1b   : > { %v384_v48 = vpack.c.bf16 %v368_v47, %v367_v46 }
  0x1c   : > { %1896 = vmatmul.mubr.msk.bf16.gmra.mrb[4].mxu0 %vm400_vm0, %v372_v14 }
  0x1d   : > { %1899 = vmatprep.mubr.msk.bf16.mxu0 %vm400_vm0, %v373_v15 }
  0x24   : > { %1900 = vmatmul.mubr.msk.bf16.gmra.mrb[8].mxu0 %vm400_vm0, %v374_v20 }
  0x25   : > { %1903 = vmatprep.mubr.msk.bf16.mxu0 %vm400_vm0, %v375_v21 }
  0x2c   : > { %1904 = vmatmul.mubr.msk.bf16.gmra.mrb[12].mxu0 %vm400_vm0, %v376_v26 }
  0x2d   : > { %1907 = vmatprep.mubr.msk.bf16.mxu0 %vm400_vm0, %v377_v27 }
  0x34   : > { %1908 = vmatmul.mubr.msk.bf16.gmra.mrb[16].mxu0 %vm400_vm0, %v378_v32 }
  0x35   : > { %1911 = vmatprep.mubr.msk.bf16.mxu0 %vm400_vm0, %v379_v33 }
  0x3c   : > { %1912 = vmatmul.mubr.msk.bf16.gmra.mrb[20].mxu0 %vm400_vm0, %v380_v38 }
  0x3d   : > { %1915 = vmatprep.mubr.msk.bf16.mxu0 %vm400_vm0, %v381_v39 }
  0x44   : > { %1916 = vmatmul.mubr.msk.bf16.gmra.mrb[24].mxu0 %vm400_vm0, %v382_v44 }
  0x45   : > { %1919 = vmatprep.mubr.msk.bf16.mxu0 %vm400_vm0, %v383_v45 }
  0x4c   : > { %1920 = vmatmul.mubr.msk.bf16.gmra.mrb[28].mxu0 %vm400_vm0, %v384_v48 }
  0xe7   : > { %v1893_v54 = vpop.f32.mrb[0].mxu0 }
  0xe8   : > { %v492_v55 = vadd.f32 %v1893_v54, %v2316_v53  ;;  %v483_v56 = vpop.f32.mrb[1].mxu0 }
  0xe9   : > { %v484_v57 = vadd.f32 %v2316_v53, %v483_v56  ;;  %v1894_v58 = vpop.f32.mrb[2].mxu0 }
  0xea   : > { %v495_v59 = vadd.f32 %v1894_v58, %v2316_v53  ;;  %v486_v60 = vpop.f32.mrb[3].mxu0  ;;  %v612_v62 = vmax.f32 %v492_v55, 0.0 }
  0xeb   : > { %v487_v61 = vadd.f32 %v2316_v53, %v486_v60  ;;  %v610_v0 = vmax.f32 %v484_v57, 0.0 }
  0xec   : > { %v613_v63 = vmax.f32 %v495_v59, 0.0 }
  0xed   : > { %v611_v1 = vmax.f32 %v487_v61, 0.0 }
  0xee   : > { %v643_v2 = vpack.c.bf16 %v613_v63, %v612_v62 }
  0xef   : > { %v1897_v3 = vpop.f32.mrb[4].mxu0  ;;  %v642_v4 = vpack.c.bf16 %v611_v1, %v610_v0 }
  0xf0   : > { %v508_v5 = vadd.f32 %v1897_v3, %v2316_v53  ;;  %v499_v6 = vpop.f32.mrb[5].mxu0 }
  0xf1   : > { %v500_v7 = vadd.f32 %v2316_v53, %v499_v6  ;;  %v1898_v8 = vpop.f32.mrb[6].mxu0  ;;  %1927 = vmatprep.mubr.msk.bf16.mxu1 %vm681_vm1, %v642_v4 }
  0xf2   : > { %v511_v9 = vadd.f32 %v1898_v8, %v2316_v53  ;;  %v502_v10 = vpop.f32.mrb[7].mxu0  ;;  %1928 = vmatmul.mubr.msk.bf16.vlgmr.msra.gmra.mrb[0].mxu1 %vm681_vm1, %v643_v2  ;;  %v616_v12 = vmax.f32 %v508_v5, 0.0 }
  0xf3   : > { %v503_v11 = vadd.f32 %v2316_v53, %v502_v10  ;;  %v614_v14 = vmax.f32 %v500_v7, 0.0 }
  0xf4   : > { %v617_v13 = vmax.f32 %v511_v9, 0.0 }
  0xf5   : > { %v615_v15 = vmax.f32 %v503_v11, 0.0 }
  0xf6   : > { %v645_v16 = vpack.c.bf16 %v617_v13, %v616_v12 }
  0xf7   : > { %v644_v17 = vpack.c.bf16 %v615_v15, %v614_v14  ;;  %v1901_v18 = vpop.f32.mrb[8].mxu0 }
  0xf8   : > { %v524_v19 = vadd.f32 %v1901_v18, %v2316_v53  ;;  %v515_v20 = vpop.f32.mrb[9].mxu0 }
  0xf9   : > { %v516_v21 = vadd.f32 %v2316_v53, %v515_v20  ;;  %v1902_v22 = vpop.f32.mrb[10].mxu0  ;;  %1931 = vmatprep.mubr.msk.bf16.mxu1 %vm681_vm1, %v644_v17 }
  0xfa   : > { %v527_v23 = vadd.f32 %v1902_v22, %v2316_v53  ;;  %v518_v24 = vpop.f32.mrb[11].mxu0  ;;  %1932 = vmatmul.mubr.msk.bf16.gmra.mrb[4].mxu1 %vm681_vm1, %v645_v16  ;;  %v620_v26 = vmax.f32 %v524_v19, 0.0 }
  0xfb   : > { %v519_v25 = vadd.f32 %v2316_v53, %v518_v24  ;;  %v618_v28 = vmax.f32 %v516_v21, 0.0 }
  0xfc   : > { %v621_v27 = vmax.f32 %v527_v23, 0.0 }
  0xfd   : > { %v619_v29 = vmax.f32 %v519_v25, 0.0 }
  0xfe   : > { %v647_v30 = vpack.c.bf16 %v621_v27, %v620_v26 }
  0xff   : > { %v646_v31 = vpack.c.bf16 %v619_v29, %v618_v28  ;;  %v1905_v32 = vpop.f32.mrb[12].mxu0 }
 0x100   : > { %v540_v33 = vadd.f32 %v1905_v32, %v2316_v53  ;;  %v531_v34 = vpop.f32.mrb[13].mxu0 }
 0x101   : > { %v532_v35 = vadd.f32 %v2316_v53, %v531_v34  ;;  %v1906_v36 = vpop.f32.mrb[14].mxu0  ;;  %1935 = vmatprep.mubr.msk.bf16.mxu1 %vm681_vm1, %v646_v31 }
 0x102   : > { %v543_v37 = vadd.f32 %v1906_v36, %v2316_v53  ;;  %v534_v38 = vpop.f32.mrb[15].mxu0  ;;  %1936 = vmatmul.mubr.msk.bf16.gmra.mrb[8].mxu1 %vm681_vm1, %v647_v30  ;;  %v624_v40 = vmax.f32 %v540_v33, 0.0 }
 0x103   : > { %v535_v39 = vadd.f32 %v2316_v53, %v534_v38  ;;  %v622_v42 = vmax.f32 %v532_v35, 0.0 }
 0x104   : > { %v625_v41 = vmax.f32 %v543_v37, 0.0 }
 0x105   : > { %v623_v43 = vmax.f32 %v535_v39, 0.0  ;;  %v2044_v39 = vld [vmem:[%s2596_s7] sm:$0xff]  }
 0x106   : > { %v649_v44 = vpack.c.bf16 %v625_v41, %v624_v40  ;;  %v2045_v40 = vld [vmem:[%s2596_s7 + $0x8] sm:$0xff]   ;;  %1995 = vmatprep.subr.bf16.mxu1 %v2044_v39 }
 0x107   : > { %v648_v45 = vpack.c.bf16 %v623_v43, %v622_v42  ;;  %v1909_v46 = vpop.f32.mrb[16].mxu0  ;;  %1996 = vmatpush3.bf16.msra.mxu1 %v2044_v39 }
 0x108   : > { %v556_v47 = vadd.f32 %v1909_v46, %v2316_v53  ;;  %v547_v48 = vpop.f32.mrb[17].mxu0  ;;  %1997 = vmatprep.subr.bf16.mxu1 %v2045_v40 }
 0x109   : > { %v548_v49 = vadd.f32 %v2316_v53, %v547_v48  ;;  %v1910_v50 = vpop.f32.mrb[18].mxu0  ;;  %1939 = vmatprep.mubr.msk.bf16.mxu1 %vm681_vm1, %v648_v45 }
 0x10a   : > { %v559_v51 = vadd.f32 %v1910_v50, %v2316_v53  ;;  %v550_v52 = vpop.f32.mrb[19].mxu0  ;;  %1940 = vmatmul.mubr.msk.bf16.gmra.mrb[12].mxu1 %vm681_vm1, %v649_v44  ;;  %v628_v55 = vmax.f32 %v556_v47, 0.0 }
 0x10b   : > { %v551_v54 = vadd.f32 %v2316_v53, %v550_v52  ;;  %v626_v57 = vmax.f32 %v548_v49, 0.0  ;;  %1998 = vmatpush3.bf16.msra.mxu1 %v2045_v40 }
 0x10c   : > { %v629_v56 = vmax.f32 %v559_v51, 0.0 }
 0x10d   : > { %v627_v58 = vmax.f32 %v551_v54, 0.0 }
 0x10e   : > { %v651_v59 = vpack.c.bf16 %v629_v56, %v628_v55 }
 0x10f   : > { %v650_v60 = vpack.c.bf16 %v627_v58, %v626_v57  ;;  %v1913_v61 = vpop.f32.mrb[20].mxu0 }
 0x110   : > { %v572_v62 = vadd.f32 %v1913_v61, %v2316_v53  ;;  %v563_v63 = vpop.f32.mrb[21].mxu0 }
 0x111   : > { %v564_v0 = vadd.f32 %v2316_v53, %v563_v63  ;;  %v1914_v1 = vpop.f32.mrb[22].mxu0  ;;  %1943 = vmatprep.mubr.msk.bf16.mxu1 %vm681_vm1, %v650_v60 }
 0x112   : > { %v575_v2 = vadd.f32 %v1914_v1, %v2316_v53  ;;  %v566_v3 = vpop.f32.mrb[23].mxu0  ;;  %1944 = vmatmul.mubr.msk.bf16.gmra.mrb[16].mxu1 %vm681_vm1, %v651_v59  ;;  %v632_v5 = vmax.f32 %v572_v62, 0.0 }
 0x113   : > { %v567_v4 = vadd.f32 %v2316_v53, %v566_v3  ;;  %v630_v7 = vmax.f32 %v564_v0, 0.0 }
 0x114   : > { %v633_v6 = vmax.f32 %v575_v2, 0.0 }
 0x115   : > { %v631_v8 = vmax.f32 %v567_v4, 0.0 }
 0x116   : > { %v653_v9 = vpack.c.bf16 %v633_v6, %v632_v5 }
 0x117   : > { %v652_v10 = vpack.c.bf16 %v631_v8, %v630_v7  ;;  %v1917_v11 = vpop.f32.mrb[24].mxu0 }
 0x118   : > { %v588_v12 = vadd.f32 %v1917_v11, %v2316_v53  ;;  %v579_v13 = vpop.f32.mrb[25].mxu0 }
 0x119   : > { %v580_v14 = vadd.f32 %v2316_v53, %v579_v13  ;;  %v1918_v15 = vpop.f32.mrb[26].mxu0  ;;  %1947 = vmatprep.mubr.msk.bf16.mxu1 %vm681_vm1, %v652_v10 }
 0x11a   : > { %v591_v16 = vadd.f32 %v1918_v15, %v2316_v53  ;;  %v582_v17 = vpop.f32.mrb[27].mxu0  ;;  %1948 = vmatmul.mubr.msk.bf16.gmra.mrb[20].mxu1 %vm681_vm1, %v653_v9  ;;  %v636_v19 = vmax.f32 %v588_v12, 0.0 }
 0x11b   : > { %v583_v18 = vadd.f32 %v2316_v53, %v582_v17  ;;  %v634_v21 = vmax.f32 %v580_v14, 0.0 }
 0x11c   : > { %v637_v20 = vmax.f32 %v591_v16, 0.0 }
 0x11d   : > { %v635_v22 = vmax.f32 %v583_v18, 0.0 }
 0x11e   : > { %v655_v23 = vpack.c.bf16 %v637_v20, %v636_v19 }
 0x11f   : > { %v654_v24 = vpack.c.bf16 %v635_v22, %v634_v21  ;;  %v1921_v25 = vpop.f32.mrb[28].mxu0 }
 0x120   : > { %v604_v26 = vadd.f32 %v1921_v25, %v2316_v53  ;;  %v595_v27 = vpop.f32.mrb[29].mxu0 }
 0x121   : > { %v596_v28 = vadd.f32 %v2316_v53, %v595_v27  ;;  %v1922_v29 = vpop.f32.mrb[30].mxu0  ;;  %1951 = vmatprep.mubr.msk.bf16.mxu1 %vm681_vm1, %v654_v24 }
 0x122   : > { %v607_v30 = vadd.f32 %v1922_v29, %v2316_v53  ;;  %v598_v31 = vpop.f32.mrb[31].mxu0  ;;  %1952 = vmatmul.mubr.msk.bf16.gmra.mrb[24].mxu1 %vm681_vm1, %v655_v23  ;;  %v640_v33 = vmax.f32 %v604_v26, 0.0 }
 0x123   : > { %v599_v32 = vadd.f32 %v2316_v53, %v598_v31  ;;  %v638_v35 = vmax.f32 %v596_v28, 0.0  ;;  %v2375_v53 = vld [vmem:[%s2593_s4] ss:$0 sm:$0xff] }
 0x124   : > { %v641_v34 = vmax.f32 %v607_v30, 0.0 }
 0x125   : > { %v639_v36 = vmax.f32 %v599_v32, 0.0 }
 0x126   : > { %v657_v37 = vpack.c.bf16 %v641_v34, %v640_v33 }
 0x127   : > { %v656_v38 = vpack.c.bf16 %v639_v36, %v638_v35 }
 0x129   : > { %1955 = vmatprep.mubr.msk.bf16.mxu1 %vm681_vm1, %v656_v38 }
 0x12a   : > { %1956 = vmatmul.mubr.msk.bf16.gmra.mrb[28].mxu1 %vm681_vm1, %v657_v37 }
 0x1c5   : > { %v1929_v41 = vpop.f32.mrb[0].mxu1 }
 0x1c6   : > { %v773_v42 = vadd.f32 %v1929_v41, %v2375_v53  ;;  %v764_v43 = vpop.f32.mrb[1].mxu1 }
 0x1c7   : > { %v765_v44 = vadd.f32 %v2375_v53, %v764_v43  ;;  %v1930_v45 = vpop.f32.mrb[2].mxu1 }
 0x1c8   : > { %v776_v46 = vadd.f32 %v1930_v45, %v2375_v53  ;;  %v767_v47 = vpop.f32.mrb[3].mxu1  ;;  %v893_v49 = vmax.f32 %v773_v42, 0.0 }
 0x1c9   : > { %v768_v48 = vadd.f32 %v2375_v53, %v767_v47  ;;  %v891_v51 = vmax.f32 %v765_v44, 0.0 }
 0x1ca   : > { %v894_v50 = vmax.f32 %v776_v46, 0.0 }
 0x1cb   : > { %v892_v52 = vmax.f32 %v768_v48, 0.0 }
 0x1cc   : > { %v924_v54 = vpack.c.bf16 %v894_v50, %v893_v49 }
 0x1cd   : > { %v923_v55 = vpack.c.bf16 %v892_v52, %v891_v51  ;;  %v1933_v56 = vpop.f32.mrb[4].mxu1 }
 0x1ce   : > { %v789_v57 = vadd.f32 %v1933_v56, %v2375_v53  ;;  %v780_v58 = vpop.f32.mrb[5].mxu1 }
 0x1cf   : > { %v781_v59 = vadd.f32 %v2375_v53, %v780_v58  ;;  %v1934_v60 = vpop.f32.mrb[6].mxu1  ;;  %1963 = vmatprep.mubr.msk.bf16.mxu0 %vm681_vm1, %v923_v55 }
 0x1d0   : > { %v792_v61 = vadd.f32 %v1934_v60, %v2375_v53  ;;  %v783_v62 = vpop.f32.mrb[7].mxu1  ;;  %1964 = vmatmul.mubr.msk.bf16.vlgmr.msra.gmra.mrb[32].mxu0 %vm681_vm1, %v924_v54  ;;  %v897_v0 = vmax.f32 %v789_v57, 0.0 }
 0x1d1   : > { %v784_v63 = vadd.f32 %v2375_v53, %v783_v62  ;;  %v895_v2 = vmax.f32 %v781_v59, 0.0 }
 0x1d2   : > { %v898_v1 = vmax.f32 %v792_v61, 0.0 }
 0x1d3   : > { %v896_v3 = vmax.f32 %v784_v63, 0.0 }
 0x1d4   : > { %v926_v4 = vpack.c.bf16 %v898_v1, %v897_v0 }
 0x1d5   : > { %v925_v5 = vpack.c.bf16 %v896_v3, %v895_v2  ;;  %v1937_v6 = vpop.f32.mrb[8].mxu1 }
 0x1d6   : > { %v805_v7 = vadd.f32 %v1937_v6, %v2375_v53  ;;  %v796_v8 = vpop.f32.mrb[9].mxu1 }
 0x1d7   : > { %v797_v9 = vadd.f32 %v2375_v53, %v796_v8  ;;  %v1938_v10 = vpop.f32.mrb[10].mxu1  ;;  %1967 = vmatprep.mubr.msk.bf16.mxu0 %vm681_vm1, %v925_v5 }
 0x1d8   : > { %v808_v11 = vadd.f32 %v1938_v10, %v2375_v53  ;;  %v799_v12 = vpop.f32.mrb[11].mxu1  ;;  %1968 = vmatmul.mubr.msk.bf16.gmra.mrb[36].mxu0 %vm681_vm1, %v926_v4  ;;  %v901_v14 = vmax.f32 %v805_v7, 0.0 }
 0x1d9   : > { %v800_v13 = vadd.f32 %v2375_v53, %v799_v12  ;;  %v899_v16 = vmax.f32 %v797_v9, 0.0 }
 0x1da   : > { %v902_v15 = vmax.f32 %v808_v11, 0.0 }
 0x1db   : > { %v900_v17 = vmax.f32 %v800_v13, 0.0 }
 0x1dc   : > { %v928_v18 = vpack.c.bf16 %v902_v15, %v901_v14 }
 0x1dd   : > { %v927_v19 = vpack.c.bf16 %v900_v17, %v899_v16  ;;  %v1941_v20 = vpop.f32.mrb[12].mxu1 }
 0x1de   : > { %v821_v21 = vadd.f32 %v1941_v20, %v2375_v53  ;;  %v812_v22 = vpop.f32.mrb[13].mxu1 }
 0x1df   : > { %v813_v23 = vadd.f32 %v2375_v53, %v812_v22  ;;  %v1942_v24 = vpop.f32.mrb[14].mxu1  ;;  %1971 = vmatprep.mubr.msk.bf16.mxu0 %vm681_vm1, %v927_v19 }
 0x1e0   : > { %v824_v25 = vadd.f32 %v1942_v24, %v2375_v53  ;;  %v815_v26 = vpop.f32.mrb[15].mxu1  ;;  %1972 = vmatmul.mubr.msk.bf16.gmra.mrb[40].mxu0 %vm681_vm1, %v928_v18  ;;  %v905_v28 = vmax.f32 %v821_v21, 0.0 }
 0x1e1   : > { %v816_v27 = vadd.f32 %v2375_v53, %v815_v26  ;;  %v903_v30 = vmax.f32 %v813_v23, 0.0 }
 0x1e2   : > { %v906_v29 = vmax.f32 %v824_v25, 0.0 }
 0x1e3   : > { %v904_v31 = vmax.f32 %v816_v27, 0.0  ;;  %v2428_v27 = vld [vmem:[%s2595_s6] ss:$0 sm:$0xff] }
 0x1e4   : > { %v930_v32 = vpack.c.bf16 %v906_v29, %v905_v28 }
 0x1e5   : > { %v929_v33 = vpack.c.bf16 %v904_v31, %v903_v30  ;;  %v1945_v34 = vpop.f32.mrb[16].mxu1 }
 0x1e6   : > { %v837_v35 = vadd.f32 %v1945_v34, %v2375_v53  ;;  %v828_v36 = vpop.f32.mrb[17].mxu1 }
 0x1e7   : > { %v829_v37 = vadd.f32 %v2375_v53, %v828_v36  ;;  %v1946_v38 = vpop.f32.mrb[18].mxu1  ;;  %1975 = vmatprep.mubr.msk.bf16.mxu0 %vm681_vm1, %v929_v33 }
 0x1e8   : > { %v840_v39 = vadd.f32 %v1946_v38, %v2375_v53  ;;  %v831_v40 = vpop.f32.mrb[19].mxu1  ;;  %1976 = vmatmul.mubr.msk.bf16.gmra.mrb[44].mxu0 %vm681_vm1, %v930_v32  ;;  %v909_v42 = vmax.f32 %v837_v35, 0.0 }
 0x1e9   : > { %v832_v41 = vadd.f32 %v2375_v53, %v831_v40  ;;  %v907_v44 = vmax.f32 %v829_v37, 0.0 }
 0x1ea   : > { %v910_v43 = vmax.f32 %v840_v39, 0.0 }
 0x1eb   : > { %v908_v45 = vmax.f32 %v832_v41, 0.0 }
 0x1ec   : > { %v932_v46 = vpack.c.bf16 %v910_v43, %v909_v42 }
 0x1ed   : > { %v931_v47 = vpack.c.bf16 %v908_v45, %v907_v44  ;;  %v1949_v48 = vpop.f32.mrb[20].mxu1 }
 0x1ee   : > { %v853_v49 = vadd.f32 %v1949_v48, %v2375_v53  ;;  %v844_v50 = vpop.f32.mrb[21].mxu1 }
 0x1ef   : > { %v845_v51 = vadd.f32 %v2375_v53, %v844_v50  ;;  %v1950_v52 = vpop.f32.mrb[22].mxu1  ;;  %1979 = vmatprep.mubr.msk.bf16.mxu0 %vm681_vm1, %v931_v47 }
 0x1f0   : > { %v856_v54 = vadd.f32 %v1950_v52, %v2375_v53  ;;  %v847_v55 = vpop.f32.mrb[23].mxu1  ;;  %1980 = vmatmul.mubr.msk.bf16.gmra.mrb[48].mxu0 %vm681_vm1, %v932_v46  ;;  %v913_v57 = vmax.f32 %v853_v49, 0.0 }
 0x1f1   : > { %v848_v56 = vadd.f32 %v2375_v53, %v847_v55  ;;  %v911_v59 = vmax.f32 %v845_v51, 0.0 }
 0x1f2   : > { %v914_v58 = vmax.f32 %v856_v54, 0.0 }
 0x1f3   : > { %v912_v60 = vmax.f32 %v848_v56, 0.0 }
 0x1f4   : > { %v934_v61 = vpack.c.bf16 %v914_v58, %v913_v57 }
 0x1f5   : > { %v933_v62 = vpack.c.bf16 %v912_v60, %v911_v59  ;;  %v1953_v63 = vpop.f32.mrb[24].mxu1 }
 0x1f6   : > { %v869_v0 = vadd.f32 %v1953_v63, %v2375_v53  ;;  %v860_v1 = vpop.f32.mrb[25].mxu1 }
 0x1f7   : > { %v861_v2 = vadd.f32 %v2375_v53, %v860_v1  ;;  %v1954_v3 = vpop.f32.mrb[26].mxu1  ;;  %1983 = vmatprep.mubr.msk.bf16.mxu0 %vm681_vm1, %v933_v62 }
 0x1f8   : > { %v872_v4 = vadd.f32 %v1954_v3, %v2375_v53  ;;  %v863_v5 = vpop.f32.mrb[27].mxu1  ;;  %1984 = vmatmul.mubr.msk.bf16.gmra.mrb[52].mxu0 %vm681_vm1, %v934_v61  ;;  %v917_v7 = vmax.f32 %v869_v0, 0.0 }
 0x1f9   : > { %v864_v6 = vadd.f32 %v2375_v53, %v863_v5  ;;  %v915_v9 = vmax.f32 %v861_v2, 0.0 }
 0x1fa   : > { %v918_v8 = vmax.f32 %v872_v4, 0.0 }
 0x1fb   : > { %v916_v10 = vmax.f32 %v864_v6, 0.0 }
 0x1fc   : > { %v936_v11 = vpack.c.bf16 %v918_v8, %v917_v7 }
 0x1fd   : > { %v935_v12 = vpack.c.bf16 %v916_v10, %v915_v9  ;;  %v1957_v13 = vpop.f32.mrb[28].mxu1 }
 0x1fe   : > { %v885_v14 = vadd.f32 %v1957_v13, %v2375_v53  ;;  %v876_v15 = vpop.f32.mrb[29].mxu1 }
 0x1ff   : > { %v877_v16 = vadd.f32 %v2375_v53, %v876_v15  ;;  %v1958_v17 = vpop.f32.mrb[30].mxu1  ;;  %1987 = vmatprep.mubr.msk.bf16.mxu0 %vm681_vm1, %v935_v12 }
 0x200   : > { %v888_v18 = vadd.f32 %v1958_v17, %v2375_v53  ;;  %v879_v19 = vpop.f32.mrb[31].mxu1  ;;  %1988 = vmatmul.mubr.msk.bf16.gmra.mrb[56].mxu0 %vm681_vm1, %v936_v11  ;;  %v921_v21 = vmax.f32 %v885_v14, 0.0 }
 0x201   : > { %v880_v20 = vadd.f32 %v2375_v53, %v879_v19  ;;  %v919_v23 = vmax.f32 %v877_v16, 0.0 }
 0x202   : > { %v922_v22 = vmax.f32 %v888_v18, 0.0 }
 0x203   : > { %v920_v24 = vmax.f32 %v880_v20, 0.0 }
 0x204   : > { %v938_v25 = vpack.c.bf16 %v922_v22, %v921_v21 }
 0x205   : > { %v937_v26 = vpack.c.bf16 %v920_v24, %v919_v23 }
 0x207   : > { %1991 = vmatprep.mubr.msk.bf16.mxu0 %vm681_vm1, %v937_v26 }
 0x208   : > { %1992 = vmatmul.mubr.msk.bf16.gmra.mrb[60].mxu0 %vm681_vm1, %v938_v25 }
 0x2a3   : > { %v1965_v28 = vpop.f32.mrb[32].mxu0 }
 0x2a4   : > { %v1053_v29 = vadd.f32 %v1965_v28, %v2428_v27  ;;  %v1044_v30 = vpop.f32.mrb[33].mxu0 }
 0x2a5   : > { %v1045_v53 = vadd.f32 %v2428_v27, %v1044_v30  ;;  %v1966_v31 = vpop.f32.mrb[34].mxu0 }
 0x2a6   : > { %v1056_v32 = vadd.f32 %v1966_v31, %v2428_v27  ;;  %v1047_v33 = vpop.f32.mrb[35].mxu0  ;;  %v1173_v35 = vmax.f32 %v1053_v29, 0.0 }
 0x2a7   : > { %v1048_v34 = vadd.f32 %v2428_v27, %v1047_v33  ;;  %v1171_v37 = vmax.f32 %v1045_v53, 0.0 }
 0x2a8   : > { %v1174_v36 = vmax.f32 %v1056_v32, 0.0 }
 0x2a9   : > { %v1172_v38 = vmax.f32 %v1048_v34, 0.0 }
 0x2aa   : > { %v1204_v39 = vpack.c.bf16 %v1174_v36, %v1173_v35 }
 0x2ab   : > { %v1203_v40 = vpack.c.bf16 %v1172_v38, %v1171_v37  ;;  %v1969_v41 = vpop.f32.mrb[36].mxu0 }
 0x2ac   : > { %v1069_v42 = vadd.f32 %v1969_v41, %v2428_v27  ;;  %v1060_v43 = vpop.f32.mrb[37].mxu0 }
 0x2ad   : > { %v1061_v44 = vadd.f32 %v2428_v27, %v1060_v43  ;;  %v1970_v45 = vpop.f32.mrb[38].mxu0  ;;  %1999 = vmatprep.mubr.msk.bf16.mxu1 %vm681_vm1, %v1203_v40 }
 0x2ae   : > { %v1072_v46 = vadd.f32 %v1970_v45, %v2428_v27  ;;  %v1063_v47 = vpop.f32.mrb[39].mxu0  ;;  %2000 = vmatmul.mubr.msk.bf16.vlgmr.msra.gmra.mrb[32].mxu1 %vm681_vm1, %v1204_v39  ;;  %v1177_v49 = vmax.f32 %v1069_v42, 0.0 }
 0x2af   : > { %v1064_v48 = vadd.f32 %v2428_v27, %v1063_v47  ;;  %v1175_v51 = vmax.f32 %v1061_v44, 0.0 }
 0x2b0   : > { %v1178_v50 = vmax.f32 %v1072_v46, 0.0 }
 0x2b1   : > { %v1176_v52 = vmax.f32 %v1064_v48, 0.0 }
 0x2b2   : > { %v1206_v54 = vpack.c.bf16 %v1178_v50, %v1177_v49 }
 0x2b3   : > { %v1205_v55 = vpack.c.bf16 %v1176_v52, %v1175_v51  ;;  %v1973_v56 = vpop.f32.mrb[40].mxu0 }
 0x2b4   : > { %v1085_v57 = vadd.f32 %v1973_v56, %v2428_v27  ;;  %v1076_v58 = vpop.f32.mrb[41].mxu0 }
 0x2b5   : > { %v1077_v59 = vadd.f32 %v2428_v27, %v1076_v58  ;;  %v1974_v60 = vpop.f32.mrb[42].mxu0  ;;  %2003 = vmatprep.mubr.msk.bf16.mxu1 %vm681_vm1, %v1205_v55 }
 0x2b6   : > { %v1088_v61 = vadd.f32 %v1974_v60, %v2428_v27  ;;  %v1079_v62 = vpop.f32.mrb[43].mxu0  ;;  %2004 = vmatmul.mubr.msk.bf16.gmra.mrb[36].mxu1 %vm681_vm1, %v1206_v54  ;;  %v1181_v0 = vmax.f32 %v1085_v57, 0.0 }
 0x2b7   : > { %v1080_v63 = vadd.f32 %v2428_v27, %v1079_v62  ;;  %v1179_v2 = vmax.f32 %v1077_v59, 0.0 }
 0x2b8   : > { %v1182_v1 = vmax.f32 %v1088_v61, 0.0 }
 0x2b9   : > { %v1180_v3 = vmax.f32 %v1080_v63, 0.0 }
 0x2ba   : > { %v1208_v4 = vpack.c.bf16 %v1182_v1, %v1181_v0 }
 0x2bb   : > { %v1207_v5 = vpack.c.bf16 %v1180_v3, %v1179_v2  ;;  %v1977_v6 = vpop.f32.mrb[44].mxu0 }
 0x2bc   : > { %v1101_v7 = vadd.f32 %v1977_v6, %v2428_v27  ;;  %v1092_v8 = vpop.f32.mrb[45].mxu0 }
 0x2bd   : > { %v1093_v9 = vadd.f32 %v2428_v27, %v1092_v8  ;;  %v1978_v10 = vpop.f32.mrb[46].mxu0  ;;  %2007 = vmatprep.mubr.msk.bf16.mxu1 %vm681_vm1, %v1207_v5 }
 0x2be   : > { %v1104_v11 = vadd.f32 %v1978_v10, %v2428_v27  ;;  %v1095_v12 = vpop.f32.mrb[47].mxu0  ;;  %2008 = vmatmul.mubr.msk.bf16.gmra.mrb[40].mxu1 %vm681_vm1, %v1208_v4  ;;  %v1185_v14 = vmax.f32 %v1101_v7, 0.0 }
 0x2bf   : > { %v1096_v13 = vadd.f32 %v2428_v27, %v1095_v12  ;;  %v1183_v16 = vmax.f32 %v1093_v9, 0.0 }
 0x2c0   : > { %v1186_v15 = vmax.f32 %v1104_v11, 0.0 }
 0x2c1   : > { %v1184_v17 = vmax.f32 %v1096_v13, 0.0  ;;  %v2481_v13 = vld [vmem:[%s2597_s8] ss:$0 sm:$0xff] }
 0x2c2   : > { %v1210_v18 = vpack.c.bf16 %v1186_v15, %v1185_v14 }
 0x2c3   : > { %v1209_v19 = vpack.c.bf16 %v1184_v17, %v1183_v16  ;;  %v1981_v20 = vpop.f32.mrb[48].mxu0 }
 0x2c4   : > { %v1117_v21 = vadd.f32 %v1981_v20, %v2428_v27  ;;  %v1108_v22 = vpop.f32.mrb[49].mxu0 }
 0x2c5   : > { %v1109_v23 = vadd.f32 %v2428_v27, %v1108_v22  ;;  %v1982_v24 = vpop.f32.mrb[50].mxu0  ;;  %2011 = vmatprep.mubr.msk.bf16.mxu1 %vm681_vm1, %v1209_v19 }
 0x2c6   : > { %v1120_v25 = vadd.f32 %v1982_v24, %v2428_v27  ;;  %v1111_v26 = vpop.f32.mrb[51].mxu0  ;;  %2012 = vmatmul.mubr.msk.bf16.gmra.mrb[44].mxu1 %vm681_vm1, %v1210_v18  ;;  %v1189_v29 = vmax.f32 %v1117_v21, 0.0 }
 0x2c7   : > { %v1112_v28 = vadd.f32 %v2428_v27, %v1111_v26  ;;  %v1187_v53 = vmax.f32 %v1109_v23, 0.0 }
 0x2c8   : > { %v1190_v30 = vmax.f32 %v1120_v25, 0.0 }
 0x2c9   : > { %v1188_v31 = vmax.f32 %v1112_v28, 0.0 }
 0x2ca   : > { %v1212_v32 = vpack.c.bf16 %v1190_v30, %v1189_v29 }
 0x2cb   : > { %v1211_v33 = vpack.c.bf16 %v1188_v31, %v1187_v53  ;;  %v1985_v34 = vpop.f32.mrb[52].mxu0 }
 0x2cc   : > { %v1133_v35 = vadd.f32 %v1985_v34, %v2428_v27  ;;  %v1124_v36 = vpop.f32.mrb[53].mxu0 }
 0x2cd   : > { %v1125_v37 = vadd.f32 %v2428_v27, %v1124_v36  ;;  %v1986_v38 = vpop.f32.mrb[54].mxu0  ;;  %2015 = vmatprep.mubr.msk.bf16.mxu1 %vm681_vm1, %v1211_v33 }
 0x2ce   : > { %v1136_v39 = vadd.f32 %v1986_v38, %v2428_v27  ;;  %v1127_v40 = vpop.f32.mrb[55].mxu0  ;;  %2016 = vmatmul.mubr.msk.bf16.gmra.mrb[48].mxu1 %vm681_vm1, %v1212_v32  ;;  %v1193_v42 = vmax.f32 %v1133_v35, 0.0 }
 0x2cf   : > { %v1128_v41 = vadd.f32 %v2428_v27, %v1127_v40  ;;  %v1191_v44 = vmax.f32 %v1125_v37, 0.0 }
 0x2d0   : > { %v1194_v43 = vmax.f32 %v1136_v39, 0.0 }
 0x2d1   : > { %v1192_v45 = vmax.f32 %v1128_v41, 0.0 }
 0x2d2   : > { %v1214_v46 = vpack.c.bf16 %v1194_v43, %v1193_v42 }
 0x2d3   : > { %v1213_v47 = vpack.c.bf16 %v1192_v45, %v1191_v44  ;;  %v1989_v48 = vpop.f32.mrb[56].mxu0 }
 0x2d4   : > { %v1149_v49 = vadd.f32 %v1989_v48, %v2428_v27  ;;  %v1140_v50 = vpop.f32.mrb[57].mxu0 }
 0x2d5   : > { %v1141_v51 = vadd.f32 %v2428_v27, %v1140_v50  ;;  %v1990_v52 = vpop.f32.mrb[58].mxu0  ;;  %2019 = vmatprep.mubr.msk.bf16.mxu1 %vm681_vm1, %v1213_v47 }
 0x2d6   : > { %v1152_v54 = vadd.f32 %v1990_v52, %v2428_v27  ;;  %v1143_v55 = vpop.f32.mrb[59].mxu0  ;;  %2020 = vmatmul.mubr.msk.bf16.gmra.mrb[52].mxu1 %vm681_vm1, %v1214_v46  ;;  %v1197_v57 = vmax.f32 %v1149_v49, 0.0 }
 0x2d7   : > { %v1144_v56 = vadd.f32 %v2428_v27, %v1143_v55  ;;  %v1195_v59 = vmax.f32 %v1141_v51, 0.0 }
 0x2d8   : > { %v1198_v58 = vmax.f32 %v1152_v54, 0.0 }
 0x2d9   : > { %v1196_v60 = vmax.f32 %v1144_v56, 0.0 }
 0x2da   : > { %v1216_v61 = vpack.c.bf16 %v1198_v58, %v1197_v57 }
 0x2db   : > { %v1215_v62 = vpack.c.bf16 %v1196_v60, %v1195_v59  ;;  %v1993_v63 = vpop.f32.mrb[60].mxu0 }
 0x2dc   : > { %v1165_v0 = vadd.f32 %v1993_v63, %v2428_v27  ;;  %v1156_v1 = vpop.f32.mrb[61].mxu0 }
 0x2dd   : > { %v1157_v2 = vadd.f32 %v2428_v27, %v1156_v1  ;;  %v1994_v3 = vpop.f32.mrb[62].mxu0  ;;  %2023 = vmatprep.mubr.msk.bf16.mxu1 %vm681_vm1, %v1215_v62 }
 0x2de   : > { %v1168_v4 = vadd.f32 %v1994_v3, %v2428_v27  ;;  %v1159_v5 = vpop.f32.mrb[63].mxu0  ;;  %2024 = vmatmul.mubr.msk.bf16.gmra.mrb[56].mxu1 %vm681_vm1, %v1216_v61  ;;  %v1201_v7 = vmax.f32 %v1165_v0, 0.0 }
 0x2df   : > { %v1160_v6 = vadd.f32 %v2428_v27, %v1159_v5  ;;  %v1199_v9 = vmax.f32 %v1157_v2, 0.0 }
 0x2e0   : > { %v1202_v8 = vmax.f32 %v1168_v4, 0.0 }
 0x2e1   : > { %v1200_v10 = vmax.f32 %v1160_v6, 0.0 }
 0x2e2   : > { %v1218_v11 = vpack.c.bf16 %v1202_v8, %v1201_v7 }
 0x2e3   : > { %v1217_v12 = vpack.c.bf16 %v1200_v10, %v1199_v9 }
 0x2e5   : > { %2027 = vmatprep.mubr.msk.bf16.mxu1 %vm681_vm1, %v1217_v12 }
 0x2e6   : > { %2028 = vmatmul.mubr.msk.bf16.gmra.mrb[60].mxu1 %vm681_vm1, %v1218_v11 }
 0x381   : > { %v2001_v14 = vpop.f32.mrb[32].mxu1 }
 0x382   : > { %v1333_v15 = vadd.f32 %v2001_v14, %v2481_v13  ;;  %v1324_v16 = vpop.f32.mrb[33].mxu1 }
 0x383   : > { %v1325_v27 = vadd.f32 %v2481_v13, %v1324_v16  ;;  %v2002_v17 = vpop.f32.mrb[34].mxu1 }
 0x384   : > { %v1453_v18 = vsub.f32 0.0, %v1333_v15  ;;  %v1336_v19 = vadd.f32 %v2002_v17, %v2481_v13  ;;  %v1327_v20 = vpop.f32.mrb[35].mxu1 }
 0x385   : > { %v1451_v21 = vsub.f32 0.0, %v1325_v27  ;;  %v1328_v22 = vadd.f32 %v2481_v13, %v1327_v20 }
 0x386   : > { %v1487_v23 = vmul.f32 1.442695, %v1453_v18  ;;  %v1454_v24 = vsub.f32 0.0, %v1336_v19 }
 0x387   : > { %v1483_v25 = vmul.f32 1.442695, %v1451_v21  ;;  %v1452_v26 = vsub.f32 0.0, %v1328_v22 }
 0x388   : > { %2046 = vpow2.f32 %v1487_v23  ;;  %v1489_v28 = vmul.f32 1.442695, %v1454_v24 }
 0x389   : > { %2048 = vpow2.f32 %v1483_v25  ;;  %v1485_v29 = vmul.f32 1.442695, %v1452_v26  ;;  %v2005_v30 = vpop.f32.mrb[36].mxu1 }
 0x38a   : > { %2050 = vpow2.f32 %v1489_v28  ;;  %v1349_v53 = vadd.f32 %v2005_v30, %v2481_v13  ;;  %v1340_v31 = vpop.f32.mrb[37].mxu1 }
 0x38b   : > { %2052 = vpow2.f32 %v1485_v29  ;;  %v1341_v32 = vadd.f32 %v2481_v13, %v1340_v31  ;;  %v2006_v33 = vpop.f32.mrb[38].mxu1 }
 0x38c   : > { %v1457_v34 = vsub.f32 0.0, %v1349_v53  ;;  %v1352_v35 = vadd.f32 %v2006_v33, %v2481_v13  ;;  %v1343_v36 = vpop.f32.mrb[39].mxu1 }
 0x38d   : > { %v1455_v37 = vsub.f32 0.0, %v1341_v32  ;;  %v1344_v38 = vadd.f32 %v2481_v13, %v1343_v36 }
 0x38e   : > { %v1495_v39 = vmul.f32 1.442695, %v1457_v34  ;;  %v1458_v40 = vsub.f32 0.0, %v1352_v35 }
 0x38f   : > { %v1491_v41 = vmul.f32 1.442695, %v1455_v37  ;;  %v1456_v42 = vsub.f32 0.0, %v1344_v38 }
 0x390   : > { %2054 = vpow2.f32 %v1495_v39  ;;  %v1497_v43 = vmul.f32 1.442695, %v1458_v40 }
 0x391   : > { %2056 = vpow2.f32 %v1491_v41  ;;  %v1493_v44 = vmul.f32 1.442695, %v1456_v42  ;;  %v2009_v45 = vpop.f32.mrb[40].mxu1 }
 0x392   : > { %v2047_v46 = vpop.eup %2046  ;;  %2058 = vpow2.f32 %v1497_v43  ;;  %v1365_v47 = vadd.f32 %v2009_v45, %v2481_v13  ;;  %v1356_v48 = vpop.f32.mrb[41].mxu1 }
 0x393   : > { %v2049_v49 = vpop.eup %2048  ;;  %v1549_v50 = vadd.f32 1.0, %v2047_v46  ;;  %2060 = vpow2.f32 %v1493_v44  ;;  %v1357_v51 = vadd.f32 %v2481_v13, %v1356_v48  ;;  %v2010_v52 = vpop.f32.mrb[42].mxu1 }
 0x394   : > { %v2051_v54 = vpop.eup %2050  ;;  %v1547_v55 = vadd.f32 1.0, %v2049_v49  ;;  %v1461_v56 = vsub.f32 0.0, %v1365_v47  ;;  %v1368_v57 = vadd.f32 %v2010_v52, %v2481_v13  ;;  %v1359_v58 = vpop.f32.mrb[43].mxu1 }
 0x395   : > { %v2053_v59 = vpop.eup %2052  ;;  %2062 = vrcp.f32 %v1549_v50  ;;  %v1550_v60 = vadd.f32 1.0, %v2051_v54  ;;  %v1459_v61 = vsub.f32 0.0, %v1357_v51  ;;  %v1360_v62 = vadd.f32 %v2481_v13, %v1359_v58 }
 0x396   : > { %2064 = vrcp.f32 %v1547_v55  ;;  %v1548_v63 = vadd.f32 1.0, %v2053_v59  ;;  %v1503_v0 = vmul.f32 1.442695, %v1461_v56  ;;  %v1462_v1 = vsub.f32 0.0, %v1368_v57 }
 0x397   : > { %2066 = vrcp.f32 %v1550_v60  ;;  %v1499_v2 = vmul.f32 1.442695, %v1459_v61  ;;  %v1460_v3 = vsub.f32 0.0, %v1360_v62 }
 0x398   : > { %2068 = vrcp.f32 %v1548_v63  ;;  %v1505_v4 = vmul.f32 1.442695, %v1462_v1 }
 0x399   : > { %2070 = vpow2.f32 %v1503_v0  ;;  %v1501_v5 = vmul.f32 1.442695, %v1460_v3  ;;  %v2013_v6 = vpop.f32.mrb[44].mxu1 }
 0x39a   : > { %v2055_v7 = vpop.eup %2054  ;;  %2072 = vpow2.f32 %v1499_v2  ;;  %v1381_v8 = vadd.f32 %v2013_v6, %v2481_v13  ;;  %v1372_v9 = vpop.f32.mrb[45].mxu1 }
 0x39b   : > { %v2057_v10 = vpop.eup %2056  ;;  %v1553_v11 = vadd.f32 1.0, %v2055_v7  ;;  %2074 = vpow2.f32 %v1505_v4  ;;  %v1373_v12 = vadd.f32 %v2481_v13, %v1372_v9  ;;  %v2014_v14 = vpop.f32.mrb[46].mxu1 }
 0x39c   : > { %v2059_v15 = vpop.eup %2058  ;;  %v1551_v16 = vadd.f32 1.0, %v2057_v10  ;;  %2076 = vpow2.f32 %v1501_v5  ;;  %v1465_v27 = vsub.f32 0.0, %v1381_v8  ;;  %v1384_v17 = vadd.f32 %v2014_v14, %v2481_v13  ;;  %v1375_v18 = vpop.f32.mrb[47].mxu1 }
 0x39d   : > { %v2061_v19 = vpop.eup %2060  ;;  %2078 = vrcp.f32 %v1553_v11  ;;  %v1554_v20 = vadd.f32 1.0, %v2059_v15  ;;  %v1463_v21 = vsub.f32 0.0, %v1373_v12  ;;  %v1376_v22 = vadd.f32 %v2481_v13, %v1375_v18 }
 0x39e   : > { %2080 = vrcp.f32 %v1551_v16  ;;  %v1552_v23 = vadd.f32 1.0, %v2061_v19  ;;  %v1511_v24 = vmul.f32 1.442695, %v1465_v27  ;;  %v1466_v25 = vsub.f32 0.0, %v1384_v17 }
 0x39f   : > { %v2063_v26 = vpop.eup %2062  ;;  %2082 = vrcp.f32 %v1554_v20  ;;  %v1507_v28 = vmul.f32 1.442695, %v1463_v21  ;;  %v1464_v29 = vsub.f32 0.0, %v1376_v22 }
 0x3a0   : > { %v2065_v30 = vpop.eup %2064  ;;  %1646 = vst.msk [vmem:[%s2503_s22 + $0x10] sm:$0xff] %vm1643_vm2, %v2063_v26  ;;  %2084 = vrcp.f32 %v1552_v23  ;;  %v1513_v53 = vmul.f32 1.442695, %v1466_v25 }
 0x3a1   : > { %v2067_v31 = vpop.eup %2066  ;;  %1644 = vst.msk [vmem:[%s2503_s22] sm:$0xff] %vm1643_vm2, %v2065_v30  ;;  %2086 = vpow2.f32 %v1511_v24  ;;  %v1509_v32 = vmul.f32 1.442695, %v1464_v29  ;;  %v2017_v33 = vpop.f32.mrb[48].mxu1 }
 0x3a2   : > { %v2069_v34 = vpop.eup %2068  ;;  %1647 = vst.msk [vmem:[%s2503_s22 + $0x18] sm:$0xff] %vm1643_vm2, %v2067_v31  ;;  %2088 = vpow2.f32 %v1507_v28  ;;  %v1397_v35 = vadd.f32 %v2017_v33, %v2481_v13  ;;  %v1388_v36 = vpop.f32.mrb[49].mxu1 }
 0x3a3   : > { %v2071_v37 = vpop.eup %2070  ;;  %1645 = vst.msk [vmem:[%s2503_s22 + $0x8] sm:$0xff] %vm1643_vm2, %v2069_v34  ;;  %2090 = vpow2.f32 %v1513_v53  ;;  %v1389_v38 = vadd.f32 %v2481_v13, %v1388_v36  ;;  %v2018_v39 = vpop.f32.mrb[50].mxu1 }
 0x3a4   : > { %v2073_v40 = vpop.eup %2072  ;;  %v1557_v41 = vadd.f32 1.0, %v2071_v37  ;;  %2092 = vpow2.f32 %v1509_v32  ;;  %v1469_v42 = vsub.f32 0.0, %v1397_v35  ;;  %v1400_v43 = vadd.f32 %v2018_v39, %v2481_v13  ;;  %v1391_v44 = vpop.f32.mrb[51].mxu1 }
 0x3a5   : > { %v2075_v45 = vpop.eup %2074  ;;  %v1555_v46 = vadd.f32 1.0, %v2073_v40  ;;  %v1467_v47 = vsub.f32 0.0, %v1389_v38  ;;  %v1392_v48 = vadd.f32 %v2481_v13, %v1391_v44 }
 0x3a6   : > { %v2077_v49 = vpop.eup %2076  ;;  %2094 = vrcp.f32 %v1557_v41  ;;  %v1558_v50 = vadd.f32 1.0, %v2075_v45  ;;  %v1519_v51 = vmul.f32 1.442695, %v1469_v42  ;;  %v1470_v52 = vsub.f32 0.0, %v1400_v43 }
 0x3a7   : > { %v2079_v54 = vpop.eup %2078  ;;  %2096 = vrcp.f32 %v1555_v46  ;;  %v1556_v55 = vadd.f32 1.0, %v2077_v49  ;;  %v1515_v56 = vmul.f32 1.442695, %v1467_v47  ;;  %v1468_v57 = vsub.f32 0.0, %v1392_v48 }
 0x3a8   : > { %v2081_v58 = vpop.eup %2080  ;;  %1650 = vst.msk [vmem:[%s2503_s22 + $0x30] sm:$0xff] %vm1643_vm2, %v2079_v54  ;;  %2098 = vrcp.f32 %v1558_v50  ;;  %v1521_v59 = vmul.f32 1.442695, %v1470_v52 }
 0x3a9   : > { %v2083_v60 = vpop.eup %2082  ;;  %1648 = vst.msk [vmem:[%s2503_s22 + $0x20] sm:$0xff] %vm1643_vm2, %v2081_v58  ;;  %2100 = vrcp.f32 %v1556_v55  ;;  %v1517_v61 = vmul.f32 1.442695, %v1468_v57  ;;  %v2021_v62 = vpop.f32.mrb[52].mxu1 }
 0x3aa   : > { %v2085_v63 = vpop.eup %2084  ;;  %1651 = vst.msk [vmem:[%s2503_s22 + $0x38] sm:$0xff] %vm1643_vm2, %v2083_v60  ;;  %2102 = vpow2.f32 %v1519_v51  ;;  %v1413_v0 = vadd.f32 %v2021_v62, %v2481_v13  ;;  %v1404_v1 = vpop.f32.mrb[53].mxu1 }
 0x3ab   : > { %v2087_v2 = vpop.eup %2086  ;;  %1649 = vst.msk [vmem:[%s2503_s22 + $0x28] sm:$0xff] %vm1643_vm2, %v2085_v63  ;;  %2104 = vpow2.f32 %v1515_v56  ;;  %v1405_v3 = vadd.f32 %v2481_v13, %v1404_v1  ;;  %v2022_v4 = vpop.f32.mrb[54].mxu1 }
 0x3ac   : > { %v2089_v5 = vpop.eup %2088  ;;  %v1561_v6 = vadd.f32 1.0, %v2087_v2  ;;  %2106 = vpow2.f32 %v1521_v59  ;;  %v1473_v7 = vsub.f32 0.0, %v1413_v0  ;;  %v1416_v8 = vadd.f32 %v2022_v4, %v2481_v13  ;;  %v1407_v9 = vpop.f32.mrb[55].mxu1 }
 0x3ad   : > { %v2091_v10 = vpop.eup %2090  ;;  %v1559_v11 = vadd.f32 1.0, %v2089_v5  ;;  %2108 = vpow2.f32 %v1517_v61  ;;  %v1471_v12 = vsub.f32 0.0, %v1405_v3  ;;  %v1408_v14 = vadd.f32 %v2481_v13, %v1407_v9 }
 0x3ae   : > { %v2093_v15 = vpop.eup %2092  ;;  %2110 = vrcp.f32 %v1561_v6  ;;  %v1562_v16 = vadd.f32 1.0, %v2091_v10  ;;  %v1527_v27 = vmul.f32 1.442695, %v1473_v7  ;;  %v1474_v17 = vsub.f32 0.0, %v1416_v8 }
 0x3af   : > { %2112 = vrcp.f32 %v1559_v11  ;;  %v1560_v18 = vadd.f32 1.0, %v2093_v15  ;;  %v1523_v19 = vmul.f32 1.442695, %v1471_v12  ;;  %v1472_v20 = vsub.f32 0.0, %v1408_v14 }
 0x3b0   : > { %v2095_v21 = vpop.eup %2094  ;;  %2114 = vrcp.f32 %v1562_v16  ;;  %v1529_v22 = vmul.f32 1.442695, %v1474_v17 }
 0x3b1   : > { %v2097_v23 = vpop.eup %2096  ;;  %1654 = vst.msk [vmem:[%s2503_s22 + $0x50] sm:$0xff] %vm1643_vm2, %v2095_v21  ;;  %2116 = vrcp.f32 %v1560_v18  ;;  %v1525_v24 = vmul.f32 1.442695, %v1472_v20  ;;  %v2025_v25 = vpop.f32.mrb[56].mxu1 }
 0x3b2   : > { %v2099_v26 = vpop.eup %2098  ;;  %1652 = vst.msk [vmem:[%s2503_s22 + $0x40] sm:$0xff] %vm1643_vm2, %v2097_v23  ;;  %2118 = vpow2.f32 %v1527_v27  ;;  %v1429_v28 = vadd.f32 %v2025_v25, %v2481_v13  ;;  %v1420_v29 = vpop.f32.mrb[57].mxu1 }
 0x3b3   : > { %v2101_v30 = vpop.eup %2100  ;;  %1655 = vst.msk [vmem:[%s2503_s22 + $0x58] sm:$0xff] %vm1643_vm2, %v2099_v26  ;;  %2120 = vpow2.f32 %v1523_v19  ;;  %v1421_v53 = vadd.f32 %v2481_v13, %v1420_v29  ;;  %v2026_v31 = vpop.f32.mrb[58].mxu1 }
 0x3b4   : > { %v2103_v32 = vpop.eup %2102  ;;  %1653 = vst.msk [vmem:[%s2503_s22 + $0x48] sm:$0xff] %vm1643_vm2, %v2101_v30  ;;  %2122 = vpow2.f32 %v1529_v22  ;;  %v1477_v33 = vsub.f32 0.0, %v1429_v28  ;;  %v1432_v34 = vadd.f32 %v2026_v31, %v2481_v13  ;;  %v1423_v35 = vpop.f32.mrb[59].mxu1 }
 0x3b5   : > { %v2105_v36 = vpop.eup %2104  ;;  %v1565_v37 = vadd.f32 1.0, %v2103_v32  ;;  %2124 = vpow2.f32 %v1525_v24  ;;  %v1475_v38 = vsub.f32 0.0, %v1421_v53  ;;  %v1424_v39 = vadd.f32 %v2481_v13, %v1423_v35 }
 0x3b6   : > { %v2107_v40 = vpop.eup %2106  ;;  %v1563_v41 = vadd.f32 1.0, %v2105_v36  ;;  %v1478_v42 = vsub.f32 0.0, %v1432_v34  ;;  %v1535_v45 = vmul.f32 1.442695, %v1477_v33 }
 0x3b7   : > { %v2109_v43 = vpop.eup %2108  ;;  %2126 = vrcp.f32 %v1565_v37  ;;  %v1566_v44 = vadd.f32 1.0, %v2107_v40  ;;  %v1476_v46 = vsub.f32 0.0, %v1424_v39  ;;  %v1531_v49 = vmul.f32 1.442695, %v1475_v38 }
 0x3b8   : > { %v2111_v47 = vpop.eup %2110  ;;  %2128 = vrcp.f32 %v1563_v41  ;;  %v1564_v48 = vadd.f32 1.0, %v2109_v43  ;;  %v1537_v51 = vmul.f32 1.442695, %v1478_v42 }
 0x3b9   : > { %v2113_v50 = vpop.eup %2112  ;;  %1658 = vst.msk [vmem:[%s2503_s22 + $0x70] sm:$0xff] %vm1643_vm2, %v2111_v47  ;;  %2130 = vrcp.f32 %v1566_v44  ;;  %v2029_v52 = vpop.f32.mrb[60].mxu1  ;;  %v1533_v55 = vmul.f32 1.442695, %v1476_v46 }
 0x3ba   : > { %v2115_v54 = vpop.eup %2114  ;;  %1656 = vst.msk [vmem:[%s2503_s22 + $0x60] sm:$0xff] %vm1643_vm2, %v2113_v50  ;;  %2132 = vrcp.f32 %v1564_v48  ;;  %v1445_v56 = vadd.f32 %v2029_v52, %v2481_v13  ;;  %v1436_v57 = vpop.f32.mrb[61].mxu1 }
 0x3bb   : > { %v2117_v58 = vpop.eup %2116  ;;  %1659 = vst.msk [vmem:[%s2503_s22 + $0x78] sm:$0xff] %vm1643_vm2, %v2115_v54  ;;  %2134 = vpow2.f32 %v1535_v45  ;;  %v1437_v59 = vadd.f32 %v2481_v13, %v1436_v57  ;;  %v2030_v60 = vpop.f32.mrb[62].mxu1 }
 0x3bc   : > { %v2119_v61 = vpop.eup %2118  ;;  %1657 = vst.msk [vmem:[%s2503_s22 + $0x68] sm:$0xff] %vm1643_vm2, %v2117_v58  ;;  %2136 = vpow2.f32 %v1531_v49  ;;  %v1481_v62 = vsub.f32 0.0, %v1445_v56  ;;  %v1448_v63 = vadd.f32 %v2030_v60, %v2481_v13  ;;  %v1439_v0 = vpop.f32.mrb[63].mxu1 }
 0x3bd   : > { %v2121_v1 = vpop.eup %2120  ;;  %v1569_v2 = vadd.f32 1.0, %v2119_v61  ;;  %2138 = vpow2.f32 %v1537_v51  ;;  %v1479_v3 = vsub.f32 0.0, %v1437_v59  ;;  %v1440_v4 = vadd.f32 %v2481_v13, %v1439_v0 }
 0x3be   : > { %v2123_v5 = vpop.eup %2122  ;;  %v1567_v6 = vadd.f32 1.0, %v2121_v1  ;;  %2140 = vpow2.f32 %v1533_v55  ;;  %v1482_v7 = vsub.f32 0.0, %v1448_v63  ;;  %v1543_v10 = vmul.f32 1.442695, %v1481_v62 }
 0x3bf   : > { %v2125_v8 = vpop.eup %2124  ;;  %2142 = vrcp.f32 %v1569_v2  ;;  %v1570_v9 = vadd.f32 1.0, %v2123_v5  ;;  %v1480_v11 = vsub.f32 0.0, %v1440_v4  ;;  %v1539_v14 = vmul.f32 1.442695, %v1479_v3 }
 0x3c0   : > { %2144 = vrcp.f32 %v1567_v6  ;;  %v1568_v12 = vadd.f32 1.0, %v2125_v8  ;;  %v1545_v16 = vmul.f32 1.442695, %v1482_v7 }
 0x3c1   : > { %v2127_v15 = vpop.eup %2126  ;;  %2146 = vrcp.f32 %v1570_v9  ;;  %v1541_v27 = vmul.f32 1.442695, %v1480_v11 }
 0x3c2   : > { %v2129_v13 = vpop.eup %2128  ;;  %1662 = vst.msk [vmem:[%s2503_s22 + $0x90] sm:$0xff] %vm1643_vm2, %v2127_v15  ;;  %2148 = vrcp.f32 %v1568_v12 }
 0x3c3   : > { %v2131_v17 = vpop.eup %2130  ;;  %1660 = vst.msk [vmem:[%s2503_s22 + $0x80] sm:$0xff] %vm1643_vm2, %v2129_v13  ;;  %2150 = vpow2.f32 %v1543_v10 }
 0x3c4   : > { %v2133_v18 = vpop.eup %2132  ;;  %1663 = vst.msk [vmem:[%s2503_s22 + $0x98] sm:$0xff] %vm1643_vm2, %v2131_v17  ;;  %2152 = vpow2.f32 %v1539_v14 }
 0x3c5   : > { %v2135_v19 = vpop.eup %2134  ;;  %1661 = vst.msk [vmem:[%s2503_s22 + $0x88] sm:$0xff] %vm1643_vm2, %v2133_v18  ;;  %2154 = vpow2.f32 %v1545_v16 }
 0x3c6   : > { %v2137_v20 = vpop.eup %2136  ;;  %v1573_v21 = vadd.f32 1.0, %v2135_v19  ;;  %2156 = vpow2.f32 %v1541_v27 }
 0x3c7   : > { %v2139_v22 = vpop.eup %2138  ;;  %v1571_v23 = vadd.f32 1.0, %v2137_v20 }
 0x3c8   : > { %v2141_v24 = vpop.eup %2140  ;;  %2158 = vrcp.f32 %v1573_v21  ;;  %v1574_v25 = vadd.f32 1.0, %v2139_v22 }
 0x3c9   : > { %v2143_v26 = vpop.eup %2142  ;;  %2160 = vrcp.f32 %v1571_v23  ;;  %v1572_v28 = vadd.f32 1.0, %v2141_v24 }
 0x3ca   : > { %v2145_v29 = vpop.eup %2144  ;;  %1666 = vst.msk [vmem:[%s2503_s22 + $0xb0] sm:$0xff] %vm1643_vm2, %v2143_v26  ;;  %2162 = vrcp.f32 %v1574_v25 }
 0x3cb   : > { %v2147_v30 = vpop.eup %2146  ;;  %1664 = vst.msk [vmem:[%s2503_s22 + $0xa0] sm:$0xff] %vm1643_vm2, %v2145_v29  ;;  %2164 = vrcp.f32 %v1572_v28 }
 0x3cc   : > { %v2149_v53 = vpop.eup %2148  ;;  %1667 = vst.msk [vmem:[%s2503_s22 + $0xb8] sm:$0xff] %vm1643_vm2, %v2147_v30 }
 0x3cd   : > { %v2151_v31 = vpop.eup %2150  ;;  %1665 = vst.msk [vmem:[%s2503_s22 + $0xa8] sm:$0xff] %vm1643_vm2, %v2149_v53 }
 0x3ce   : > { %v2153_v32 = vpop.eup %2152  ;;  %v1577_v33 = vadd.f32 1.0, %v2151_v31 }
 0x3cf   : > { %v2155_v34 = vpop.eup %2154  ;;  %v1575_v35 = vadd.f32 1.0, %v2153_v32 }
 0x3d0   : > { %v2157_v36 = vpop.eup %2156  ;;  %2166 = vrcp.f32 %v1577_v33  ;;  %v1578_v37 = vadd.f32 1.0, %v2155_v34 }
 0x3d1   : > { %2168 = vrcp.f32 %v1575_v35  ;;  %v1576_v38 = vadd.f32 1.0, %v2157_v36 }
 0x3d2   : > { %v2159_v39 = vpop.eup %2158  ;;  %2170 = vrcp.f32 %v1578_v37 }
 0x3d3   : > { %v2161_v40 = vpop.eup %2160  ;;  %1670 = vst.msk [vmem:[%s2503_s22 + $0xd0] sm:$0xff] %vm1643_vm2, %v2159_v39  ;;  %2172 = vrcp.f32 %v1576_v38 }
 0x3d4   : > { %v2163_v41 = vpop.eup %2162  ;;  %1668 = vst.msk [vmem:[%s2503_s22 + $0xc0] sm:$0xff] %vm1643_vm2, %v2161_v40 }
 0x3d5   : > { %v2165_v42 = vpop.eup %2164  ;;  %1671 = vst.msk [vmem:[%s2503_s22 + $0xd8] sm:$0xff] %vm1643_vm2, %v2163_v41 }
 0x3d6   : > { %1669 = vst.msk [vmem:[%s2503_s22 + $0xc8] sm:$0xff] %vm1643_vm2, %v2165_v42 }
 0x3da   : > { %v2167_v43 = vpop.eup %2166 }
 0x3db   : > { %v2169_v44 = vpop.eup %2168  ;;  %1674 = vst.msk [vmem:[%s2503_s22 + $0xf0] sm:$0xff] %vm1643_vm2, %v2167_v43 }
 0x3dc   : > { %v2171_v45 = vpop.eup %2170  ;;  %1672 = vst.msk [vmem:[%s2503_s22 + $0xe0] sm:$0xff] %vm1643_vm2, %v2169_v44 }
 0x3dd   : > { %v2173_v46 = vpop.eup %2172  ;;  %1675 = vst.msk [vmem:[%s2503_s22 + $0xf8] sm:$0xff] %vm1643_vm2, %v2171_v45 }
 0x3de   : > { %1673 = vst.msk [vmem:[%s2503_s22 + $0xe8] sm:$0xff] %vm1643_vm2, %v2173_v46 }
 0x3df PF: > { %s19_s30 = sadd.s32 1, %s2180_s30  }
 0x3e0   : > { %p16_p4 = scmp.ge.s32.totalorder %s19_s30, 4  }
 0x3e2   :  { %18 = sbr.rel (!%p16_p4) target bundleno = 1 (0x1), region = 86 }

</bundles_post_ra>
